<compile_context>
chip_gen: v7x
topology: tpu7x:2x2x1
jax: 0.10.0
libtpu: 0.0.40
codegen_flags: <defaults>
</compile_context>

<pallas_src>
import functools

import numpy as np
import jax
import jax.numpy as jnp
from jax import lax
from jax.experimental import pallas as pl
from jax.experimental.pallas import tpu as pltpu


def _sinusoid_table(d_model: int, max_len: int) -> np.ndarray:
    """Replicates PositionalEncoding._get_sinusoid_encoding_table (no leading 1 dim)."""
    pos = np.arange(max_len, dtype=np.float64)[:, None]          # [L, 1]
    i = np.arange(d_model, dtype=np.float64)[None, :]            # [1, D]
    angle = pos / np.power(10000.0, 2.0 * (i // 2) / d_model)    # [L, D]
    table = angle.copy()
    table[:, 0::2] = np.sin(angle[:, 0::2])
    table[:, 1::2] = np.cos(angle[:, 1::2])
    return table.astype(np.float32)


def _round_up(x: int, m: int) -> int:
    return (x + m - 1) // m * m


def _embed_kernel(tok_ref, emb_ref, pe_ref, out_ref, *, scale):
    """One grid step = one token tile of TS tokens.

    tok_ref: VMEM [TS, 1]       int32  token ids for this tile
    emb_ref: VMEM [V_pad, D_pad] f32   embedding table (resident, constant index)
    pe_ref : VMEM [TS, D_pad]    f32   positional-encoding rows for this tile
    out_ref: VMEM [TS, D_pad]    f32   output tile
    """
    ts = out_ref.shape[0]
    v_pad = emb_ref.shape[0]

    ids = tok_ref[...]                                            # [TS, 1] int32
    # Vectorized gather-as-matmul on the MXU. Out-of-range ids give an all-zero
    # one-hot row (no OOB memory access). Chosen because V is small; see the
    # large-vocab TODO at the top of the file.
    onehot = (ids == lax.broadcasted_iota(jnp.int32, (ts, v_pad), 1))
    onehot = onehot.astype(emb_ref.dtype)                         # [TS, V_pad]
    rows = jnp.dot(onehot, emb_ref[...],
                   preferred_element_type=jnp.float32)            # [TS, D_pad]

    # Single fused VPU pass + single lane-dense store for the whole tile.
    out_ref[...] = rows * scale + pe_ref[...]


def input_embedding(tokens, emb_table, pe_table, *, tile_s: int = 128):
    """tokens: [B, S] int32; emb_table: [V, D] f32; pe_table: [max_len, D] f32."""
    B, S = tokens.shape
    V, D = emb_table.shape

    # Layout-friendly padding: lanes (last dim) multiple of 128, sublanes mult of 8.
    D_pad = _round_up(D, 128)
    V_pad = _round_up(V, 8)
    TS = _round_up(min(tile_s, _round_up(S, 8)), 8)               # token tile size
    S_pad = _round_up(S, TS)
    n_s_tiles = S_pad // TS
    n_tiles = B * n_s_tiles                                       # flattened grid

    # Pad inputs (zeros). Padded token slots use id 0 and are sliced off below.
    tok_pad = jnp.zeros((B, S_pad), jnp.int32).at[:, :S].set(tokens.astype(jnp.int32))
    tok_col = tok_pad.reshape(B * S_pad, 1)

    emb_p = jnp.zeros((V_pad, D_pad), jnp.float32).at[:V, :D].set(
        emb_table.astype(jnp.float32))

    pe_rows = min(S_pad, pe_table.shape[0])
    pe_p = jnp.zeros((S_pad, D_pad), jnp.float32).at[:pe_rows, :D].set(
        pe_table[:pe_rows, :].astype(jnp.float32))

    kernel = functools.partial(_embed_kernel, scale=float(D) ** 0.5)

    grid_spec = pltpu.PrefetchScalarGridSpec(
        num_scalar_prefetch=0,
        grid=(n_tiles,),
        in_specs=[
            # Token ids: one [TS, 1] tile per grid step (sublane-dense).
            pl.BlockSpec((TS, 1), lambda i: (i, 0)),
            # Embedding table: constant block index -> DMA'd once, stays resident.
            pl.BlockSpec((V_pad, D_pad), lambda i: (0, 0)),
            # PE rows for the tile's position within the sequence.
            pl.BlockSpec((TS, D_pad), lambda i: (i % n_s_tiles, 0)),
        ],
        out_specs=pl.BlockSpec((TS, D_pad), lambda i: (i, 0)),
    )

    out_flat = pl.pallas_call(
        kernel,
        out_shape=jax.ShapeDtypeStruct((B * S_pad, D_pad), jnp.float32),
        grid_spec=grid_spec,
        compiler_params=pltpu.CompilerParams(
            dimension_semantics=("parallel",)),
    )(tok_col, emb_p, pe_p)

    return out_flat.reshape(B, S_pad, D_pad)[:, :S, :D]


if __name__ == "__main__":
    vocab_size, d_model, max_len = 32, 32, 64
    B, S = 2, 8

    key = jax.random.PRNGKey(0)
    k_emb, k_tok = jax.random.split(key)

    # Deterministic "parameters" (nn.Embedding weight ~ N(0,1)).
    emb_table = jax.random.normal(k_emb, (vocab_size, d_model), dtype=jnp.float32)
    pe_table = jnp.asarray(_sinusoid_table(d_model, max_len))

    tokens = jax.random.randint(k_tok, (B, S), 0, vocab_size, dtype=jnp.int32)

    out = input_embedding(tokens, emb_table, pe_table)
    out = jax.block_until_ready(out)

    # Pure-JAX reference (eval-mode dropout = identity).
    ref = emb_table[tokens] * (d_model ** 0.5) + pe_table[None, :S, :]
    assert out.shape == (B, S, d_model)
    np.testing.assert_allclose(np.asarray(out), np.asarray(ref), rtol=1e-5, atol=1e-5)

    print("KERNEL_OK")
</pallas_src>

<mosaic_0001>
module attributes {stable_mosaic.version = 11 : i64} {
  func.func @_embed_kernel(%arg0: i32, %arg1: memref<8x1xi32, #tpu.memory_space<vmem>>, %arg2: memref<32x128xf32, #tpu.memory_space<vmem>>, %arg3: memref<8x128xf32, #tpu.memory_space<vmem>>, %arg4: memref<8x128xf32, #tpu.memory_space<vmem>>) attributes {dimension_semantics = [#tpu.dimension_semantics<parallel>], iteration_bounds = array<i64: 2>, scalar_prefetch = 0 : i64, scratch_operands = 0 : i64, tpu.core_type = #tpu.core_type<tc>, window_params = [{transform_indices = @transform_0, window_bounds = array<i64: 8, 1>}, {pipeline_mode = #tpu.pipeline_mode<synchronous>, transform_indices = @transform_1, window_bounds = array<i64: 32, 128>}, {transform_indices = @transform_2, window_bounds = array<i64: 8, 128>}, {transform_indices = @transform_3, window_bounds = array<i64: 8, 128>}]} {
    %c0 = arith.constant 0 : index
    %c0_0 = arith.constant 0 : index
    %0 = vector.load %arg1[%c0, %c0_0] : memref<8x1xi32, #tpu.memory_space<vmem>>, vector<8x1xi32>
    %1 = tpu.iota {dimensions = array<i32: 1>} : vector<8x32xi32>
    %2 = vector.broadcast %0 : vector<8x1xi32> to vector<8x32xi32>
    %3 = arith.cmpi eq, %2, %1 : vector<8x32xi32>
    %4 = arith.extui %3 : vector<8x32xi1> to vector<8x32xi32>
    %5 = arith.sitofp %4 : vector<8x32xi32> to vector<8x32xf32>
    %c0_1 = arith.constant 0 : index
    %c0_2 = arith.constant 0 : index
    %6 = vector.load %arg2[%c0_1, %c0_2] : memref<32x128xf32, #tpu.memory_space<vmem>>, vector<32x128xf32>
    %cst = arith.constant dense<0.000000e+00> : vector<8x128xf32>
    %7 = tpu.matmul %5, %6, %cst {dimension_numbers = #tpu.dot_dimension_numbers<[1], [0], [0], [1], [0, 0, 1, 1], [], []>} : vector<8x32xf32>, vector<32x128xf32>, vector<8x128xf32> -> vector<8x128xf32>
    %cst_3 = arith.constant 5.65685415 : f32
    %8 = vector.broadcast %cst_3 : f32 to vector<8x128xf32>
    %9 = arith.mulf %7, %8 : vector<8x128xf32>
    %c0_4 = arith.constant 0 : index
    %c0_5 = arith.constant 0 : index
    %10 = vector.load %arg3[%c0_4, %c0_5] : memref<8x128xf32, #tpu.memory_space<vmem>>, vector<8x128xf32>
    %11 = arith.addf %9, %10 : vector<8x128xf32>
    %c0_6 = arith.constant 0 : index
    %c0_7 = arith.constant 0 : index
    %12 = vector.load %arg4[%c0_6, %c0_7] : memref<8x128xf32, #tpu.memory_space<vmem>>, vector<8x128xf32>
    tpu.vector_store %arg4[%c0_6, %c0_7], %11 {strides = array<i32>} : memref<8x128xf32, #tpu.memory_space<vmem>>, vector<8x128xf32>,
    return
  }
  func.func @transform_0(%arg0: i32) -> (i32, i32) {
    %c0_i32 = arith.constant 0 : i32
    %c0_i32_0 = arith.constant 0 : i32
    return %arg0, %c0_i32 : i32, i32
  }
  func.func @transform_1(%arg0: i32) -> (i32, i32) {
    %c0_i32 = arith.constant 0 : i32
    %c0_i32_0 = arith.constant 0 : i32
    %c0_i32_1 = arith.constant 0 : i32
    return %c0_i32, %c0_i32_0 : i32, i32
  }
  func.func @transform_2(%arg0: i32) -> (i32, i32) {
    %c1_i32 = arith.constant 1 : i32
    %c0_i32 = arith.constant 0 : i32
    %0 = arith.cmpi eq, %c1_i32, %c0_i32 : i32
    %c1_i32_0 = arith.constant 1 : i32
    %1 = arith.select %0, %c1_i32_0, %c1_i32 : i32
    %2 = arith.remsi %arg0, %1 : i32
    %c0_i32_1 = arith.constant 0 : i32
    %3 = arith.cmpi ne, %2, %c0_i32_1 : i32
    %c0_i32_2 = arith.constant 0 : i32
    %4 = arith.cmpi slt, %2, %c0_i32_2 : i32
    %c0_i32_3 = arith.constant 0 : i32
    %5 = arith.cmpi slt, %1, %c0_i32_3 : i32
    %6 = arith.xori %4, %5 : i1
    %7 = arith.andi %6, %3 : i1
    %8 = arith.addi %2, %1 : i32
    %9 = arith.select %7, %8, %2 : i32
    %c0_i32_4 = arith.constant 0 : i32
    %c0_i32_5 = arith.constant 0 : i32
    return %9, %c0_i32_4 : i32, i32
  }
  func.func @transform_3(%arg0: i32) -> (i32, i32) {
    %c0_i32 = arith.constant 0 : i32
    %c0_i32_0 = arith.constant 0 : i32
    return %arg0, %c0_i32 : i32, i32
  }
}

</mosaic_0001>

<bundles_post_ra>
// kernel: tpu_custom_call.1
= control target key start
LH: loop header
LB: loop body
LE: loop exit
PB: predicated region body
PF: predicated region fallthrough
CT: control target
= control target key end

     0   :  { %8 = vsyncpa [#allocation3], 0  ;;  %s712_s0 = inlined_call_operand.vmem [shape: s32[16,1], index: 0, kind: input, shape index: {}]   ;;  %s713_s1 = inlined_call_operand.hbm [shape: f32[32,128], index: 1, kind: input, shape index: {}]   ;;  %s714_s2 = inlined_call_operand.vmem [shape: f32[8,128], index: 2, kind: input, shape index: {}]   ;;  %s715_s3 = inlined_call_operand.hbm [shape: f32[16,128], index: 3, kind: output, shape index: {}]  }
   0x1   :  { %9 = vsyncpa [#allocation4], 0 }
   0x2   :  { %11 = vsyncpa [#allocation4 + $0x1], 0  ;;  %s574_s12 = smov 0   ;;  %s576_s13 = smov 0  }
   0x3   :  { %s578_s14 = smov 0   ;;  %s580_s15 = smov 0  }
   0x4 LB: > { %s595_s16 = sadd.s32 4294967295, %s544_s15   ;;  %s357_s17 = sadd.s32 4294967294, %s544_s15   ;;  %s544_s15 = sphi %s580_s15, %s731_s15   ;;  %s540_s14 = sphi %s578_s14, %s730_s14   ;;  %s536_s13 = sphi %s576_s13, %s729_s13   ;;  %s532_s12 = sphi %s574_s12, %s728_s12  }
   0x5   : > { %s599_s18 = sadd.s32 1, %s544_s15   ;;  %s92_s19 = sadd.s32 1, %s540_s14 }
   0x6   : > { %s89_s20 = ssub.s32 %s544_s15, %s599_s18  ;;  %p102_p0 = scmp.ne.s32.totalorder %s540_s14, %s536_s13 }
   0x7   : > { %p90_p1 = scmp.eq.s32.totalorder %s89_s20, 0  ;;  %p103_p2 = scmp.eq.s32.totalorder %s595_s16, 1 }
   0x8   : > { %p108_p3 = scmp.ne.s32.totalorder %s536_s13, %s532_s12  ;;  %p109_p4 = scmp.eq.s32.totalorder %s357_s17, 1 }
   0x9   : > { %s610_s21 = scalar_select %p90_p1, %s540_s14, %s92_s19  }
   0xa   : > { %p612_p5 = por %p103_p2, %p102_p0  ;;  %p616_p6 = por %p109_p4, %p108_p3 }
   0xb   : > { %p358_p7 = scmp.ge.s32.totalorder %s544_s15, 1  ;;  %p116_p8 = scmp.lt.s32.totalorder %s544_s15, 3 }
   0xc   : > { %s719_s22 = scalar_select %p612_p5, 1, 0 }
   0xd   : > { %s720_s23 = scalar_select %p616_p6, 1, 0 }
   0xe   : > { %p716_p9 = scmp.eq.s32.totalorder %s595_s16, 0  ;;  %p623_p10 = pnand %p358_p7, %p116_p8 }
   0xf   : > { %s546_s25 = smov [#allocation2]   ;;  %s450_s30 = scalar_lea.hbm %s713_s1, 512 }
  0x10   : > { %s721_s24 = scalar_select %p623_p10, 1, 0 }
  0x11   : > { %s128_s26 = sshll.u32 %s546_s25, 4  ;;  %p399_p11 = pneg %p623_p10  ;;  %s129_s26 = int_to_ptr.vmem [resolvable:$true] %s128_s26 }
  0x12   : > { %p451_p13 = scmp.ne.s32.totalorder %s713_s1, %s450_s30  ;;  %p457_p3 = scmp.lt.u32.totalorder %s450_s30, %s713_s1 }
  0x13   : > { %p631_p12 = pnand %p716_p9, %p399_p11 }
  0x15   : > { %p452_p0 = pneg %p631_p12 }
  0x17   : > { %p453_p1 = pnand %p452_p0, %p451_p13 }
  0x19   : > { %p454_p2 = pneg %p453_p1 }
  0x1b   : > { %p459_p4 = pnand %p457_p3, %p454_p2 }
  0x1d   : > { %462 = shalt.err (!%p459_p4)
}
  0x1e   : > { %s463_s8 = scalar_lea.vmem %s129_s26, 512  ;;  %p471_p9 = scmp.lt.s32.totalorder %s129_s26, %s129_s26 }
  0x1f   : > { %p464_p7 = scmp.ne.s32.totalorder %s129_s26, %s463_s8  ;;  %p472_p6 = scmp.lt.s32.totalorder %s463_s8, %s463_s8 }
  0x21   : > { %p466_p8 = pnand %p464_p7, %p452_p0  ;;  %p473_p5 = por %p472_p6, %p471_p9 }
  0x23   : > { %p467_p11 = pneg %p466_p8 }
  0x25   : > { %p474_p10 = pnand %p473_p5, %p467_p11 }
  0x27   : > { %477 = shalt.err (!%p474_p10)
}
  0x28   : > { %s547_s9 = smov 128   ;;  %s548_s10 = smov 8  }
  0x29   : > { %402 = dma.hbm_to_vmem [thread:$0]  (!%p631_p12), %s713_s1, 512, %s129_s26, [#allocation3], %s547_s9, %s547_s9, %s548_s10  }
  0x2a   : > { %p723_p13 = scmp.ne.s32.totalorder %s721_s24, 0 }
  0x2b   : > { %p724_p1 = scmp.eq.s32.totalorder (!%p723_p13), %s595_s16, 0 }
  0x2c   : > { %154 = sbr.rel (%p723_p13) target bundleno = 419 (0x1a3), region = 32 }
  0x33   : > { %523 = dma.done.wait (%p724_p1), [#allocation3], 512   ;;  %p725_p0 = pmov %p724_p1 }
  0x34   : > { %p177_p5 = scmp.lt.s32.totalorder %s595_s16, 1  ;;  %v549_v0 = vmov 0   ;;  %v550_v1 = vmov 0.0|0.0   ;;  %v190_v3 = vld [vmem:[#allocation2] sm:$0xff]  ;;  %v191_v4 = vld [vmem:[#allocation2 + $0x8] sm:$0xff]  ;;  %v192_v6 = vld [vmem:[#allocation2 + $0x10] sm:$0xff]  ;;  %v182_v10 = vlaneseq }
  0x35   : > { %525 = vsyncadd (%p725_p0), [#allocation3], 4294966784  ;;  %449 = vset.pattern.permute.xlu0 %v549_v0  ;;  %387 = vmatprep.subr.bf16.mxu0 %v550_v1  ;;  %v388_v5 = vpack.c.bf16 %v191_v4, %v190_v3  ;;  %v193_v7 = vld [vmem:[#allocation2 + $0x18] sm:$0xff]  ;;  %vm551_vm0 = vmmov 0   ;;  %v552_v8 = vmov 0.0   ;;  %vm194_vm1 = vcmask 261120  }
  0x36   : > { %s178_s19 = scalar_select %p177_p5, %s595_s16, 1  ;;  %384 = vmatprep.mubr.msk.f32.mxu0 %vm551_vm0, %v552_v8  ;;  %v391_v9 = vpack.c.bf16 %v193_v7, %v192_v6  ;;  %v183_v11 = vand.u32 127, %v182_v10  ;;  %v269_v15 = vld [vmem:[%s714_s2] sm:$0xff] }
  0x37   : > { %389 = vmatpush3.bf16.msra.mxu0 %v388_v5  ;;  %s174_s27 = sand.u32 1, %s536_s13   ;;  %s368_s4 = sshll.u32 %s595_s16, 7 }
  0x38   : > { %s364_s20 = sshll.u32 %s178_s19, 3  ;;  %390 = vmatprep.subr.bf16.mxu0 %v550_v1  ;;  %s363_s28 = sshll.u32 %s174_s27, 3 }
  0x39   : > { %s180_s24 = scalar_lea.vmem %s712_s0, %s364_s20  ;;  %s176_s5 = scalar_lea.vmem [#allocation5], %s363_s28 }
  0x3a   : > { %v181_v2 = vld [vmem:[%s180_s24] sm:$0xff]  ;;  %s286_s6 = sshll.u32 %s176_s5, 4  ;;  %s670_s9 = scalar_lea.hbm %s715_s3, %s368_s4  ;;  %s672_s6 = int_to_ptr.vmem [resolvable:$true] %s286_s6 }
  0x3b   : > { %185 = vperm.xlu0 %449, %v181_v2   ;;  %392 = vmatpush3.bf16.msra.mxu0 %v391_v9  ;;  %s273_s10 = scalar_lea.sflag [#allocation4], %s174_s27  ;;  %s478_s11 = scalar_lea.vmem %s672_s6, 128 }
  0x3c   : > { %p479_p6 = scmp.ne.s32.totalorder %s672_s6, %s478_s11  ;;  %p726_p9 = scmp.ne.s32.totalorder %s719_s22, 0 }
  0x3d   : > { %s553_s16 = smov [#allocation5]  }
  0x3e   : > { %p480_p10 = pnand %p479_p6, %p726_p9  ;;  %s482_s17 = sshll.u32 %s553_s16, 4  ;;  %s483_s17 = int_to_ptr.vmem [resolvable:$false] %s482_s17 }
  0x3f   : > { %s484_s19 = scalar_lea.vmem %s483_s17, 256  ;;  %p485_p2 = scmp.lt.s32.totalorder %s672_s6, %s483_s17 }
  0x40   : > { %p481_p12 = pneg %p480_p10  ;;  %p486_p3 = scmp.lt.s32.totalorder %s484_s19, %s478_s11 }
  0x42   : > { %p487_p4 = por %p486_p3, %p485_p2 }
  0x44   : > { %p488_p7 = pnand %p487_p4, %p481_p12 }
  0xba   : > { %v186_v12 = vpop.permute.xlu0 %185 }
  0xbb   : > { %vm187_vm2 = vcmp.eq.s32.totalorder %v186_v12, %v183_v11 }
  0xbc   : > { %v365_v13 = vsel %vm187_vm2, 1.0, %v552_v8 }
  0xbd   : > { %385 = vmatmul.mubr.msk.f32.vlgmr.msra.gmra.mrb[0].mxu0 %vm194_vm1, %v365_v13 }
 0x190   : > { %v264_v14 = vpop.f32.mrb[0].mxu0 }
 0x191   : > { %v268_v16 = vmul.f32 5.656854, %v264_v14  ;;  %v386_v17 = vpop.f32.mrb[1].mxu0 }
 0x193   : > { %v270_v18 = vadd.f32 %v269_v15, %v268_v16 }
 0x195   : > { %271 = vst [vmem:[%s176_s5] sm:$0xff] %v270_v18 }
 0x196   : > { %491 = shalt.err (!%p488_p7)
}
 0x197   : > { %s492_s20 = scalar_lea.hbm %s670_s9, 128  ;;  %s496_s24 = scalar_lea.hbm %s715_s3, 256 }
 0x198   : > { %p493_p8 = scmp.ne.s32.totalorder %s670_s9, %s492_s20  ;;  %p497_p1 = scmp.lt.u32.totalorder %s670_s9, %s715_s3 }
 0x199   : > { %p498_p0 = scmp.lt.u32.totalorder %s496_s24, %s492_s20  ;;  %p500_p6 = scmp.lt.u32.totalorder %s492_s20, %s670_s9 }
 0x19a   : > { %p494_p11 = pnand %p493_p8, %p726_p9 }
 0x19b   : > { %p499_p5 = por %p498_p0, %p497_p1 }
 0x19c   : > { %p495_p13 = pneg %p494_p11 }
 0x19d   : > { %p501_p10 = por %p500_p6, %p499_p5 }
 0x19f   : > { %p502_p12 = pnand %p501_p10, %p495_p13 }
 0x1a1   : > { %505 = shalt.err (!%p502_p12)
}
 0x1a2   : > { %397 = dma.vmem_to_hbm [thread:$0]  (%p726_p9), %s672_s6, 128, %s670_s9, %s273_s10  }
 0x1a3 PF: > { %p409_p2 = scmp.ge.s32.totalorder %s544_s15, 2  ;;  %s298_s29 = sand.u32 1, %s532_s12  }
 0x1a4   : > { %p727_p3 = scmp.ne.s32.totalorder %s720_s23, 0  ;;  %s299_s30 = scalar_lea.sflag [#allocation4], %s298_s29 }
 0x1a6   : > { %p404_p4 = pnand %p409_p2, %p727_p3 }
 0x1a8   : > { %527 = dma.done.wait (!%p404_p4), %s299_s30, 128  }
 0x1a9   : > { %529 = vsyncadd (!%p404_p4), %s299_s30, 4294967168  ;;  %p14_p7 = scmp.ge.s32.totalorder %s599_s18, 4   ;;  %s728_s12 = smov %s536_s13 }
 0x1aa   : > { %s729_s13 = smov %s540_s14  ;;  %s730_s14 = smov %s610_s21 }
 0x1ab   : > { %s731_s15 = smov %s599_s18  ;;  %16 = sbr.rel (!%p14_p7) target bundleno = 4 (0x4), region = 72 }
 0x1b2   :  { %304 = vsyncpa [#allocation3], 1 }
 0x1b3   :  { %306 = vsyncpa [#allocation3 + $0x1], 1 }
 0x1b4   :  { %307 = vsyncpa [#allocation4], 1 }
 0x1b5   :  { %309 = vsyncpa [#allocation4 + $0x1], 1 }

</bundles_post_ra>
